<compile_context>
chip_gen: v5e
topology: v5e:2x2
jax: 0.10.0
libtpu: 0.0.40
codegen_flags: <defaults>
</compile_context>

<pallas_src>
import functools

import jax
import jax.numpy as jnp
from jax.experimental import pallas as pl
from jax.experimental.pallas import tpu as pltpu


def _classifier_kernel(x_ref,
                       w1_ref, b1_ref, g1_ref, be1_ref,
                       w2_ref, b2_ref, g2_ref, be2_ref,
                       w3_ref, b3_ref,
                       out_ref, *, negative_slope, eps):
    """Fused class_classifier forward for one batch tile.

    x_ref:                (TB, Din)
    w1/w2/w3:             (Din,512), (512,256), (256,Cpad)   (in, out) layout
    b*/g*/be*:            (1, H) bias / LayerNorm gamma / LayerNorm beta rows
    out_ref:              (TB, Cpad)  lane-dense (num_class padded to 128)
    """
    x = x_ref[...].astype(jnp.float32)

    def l2norm_rows(v):
        # torch: v / torch.norm(v, 2, dim=1, keepdim=True)
        n = jnp.sqrt(jnp.sum(v * v, axis=1, keepdims=True))
        return v / n

    def layer_norm(v, gamma, beta):
        mu = jnp.mean(v, axis=1, keepdims=True)
        c = v - mu
        var = jnp.mean(c * c, axis=1, keepdims=True)
        return c * jax.lax.rsqrt(var + eps) * gamma + beta     # rsqrt -> EUP

    def act(v):
        if negative_slope == 0.0:
            return jnp.maximum(v, 0.0)                         # ReLU
        return jnp.where(v >= 0.0, v, negative_slope * v)      # LeakyReLU

    # ---- mlp1: l2_norm -> Linear -> LayerNorm -> activation ----
    h = l2norm_rows(x)
    h = jnp.dot(h, w1_ref[...], preferred_element_type=jnp.float32) + b1_ref[...]
    h = act(layer_norm(h, g1_ref[...], be1_ref[...]))
    # dp1: identity at inference

    # ---- mlp2 ----
    h = l2norm_rows(h)
    h = jnp.dot(h, w2_ref[...], preferred_element_type=jnp.float32) + b2_ref[...]
    h = act(layer_norm(h, g2_ref[...], be2_ref[...]))
    # dp2: identity at inference

    # ---- mlp3: plain Linear (weight pre-padded on the lane axis) ----
    logits = jnp.dot(h, w3_ref[...], preferred_element_type=jnp.float32) + b3_ref[...]
    out_ref[...] = logits.astype(out_ref.dtype)


def _round_up(x, m):
    return (x + m - 1) // m * m


def class_classifier_forward(x, params, *, negative_slope=0.2, eps=1e-5,
                             batch_tile=256):
    """x: (B, input_dim) float32.  params: dict of (in, out)-layout weights."""
    B, Din = x.shape
    w1, b1, g1, be1 = params["w1"], params["b1"], params["g1"], params["beta1"]
    w2, b2, g2, be2 = params["w2"], params["b2"], params["g2"], params["beta2"]
    w3, b3 = params["w3"], params["b3"]
    H2, C = w2.shape[1], w3.shape[1]

    # Lane-dense output: pad the classifier head to a multiple of 128 lanes so
    # the final store is an unmasked full-lane write (pad sliced off below).
    Cp = _round_up(max(C, 128), 128)
    w3p = jnp.zeros((H2, Cp), jnp.float32).at[:, :C].set(w3.astype(jnp.float32))
    b3p = jnp.zeros((1, Cp), jnp.float32).at[:, :C].set(
        b3.reshape(1, C).astype(jnp.float32))

    # Batch tiling: sublane-aligned tile, one tile per grid step.
    TB = batch_tile if B >= batch_tile else _round_up(B, 8)
    Bp = _round_up(B, TB)
    xp = x.astype(jnp.float32)
    if Bp != B:
        xp = jnp.pad(xp, ((0, Bp - B), (0, 0)))

    row = lambda a: a.reshape(1, -1).astype(jnp.float32)
    operands = (xp,
                w1.astype(jnp.float32), row(b1), row(g1), row(be1),
                w2.astype(jnp.float32), row(b2), row(g2), row(be2),
                w3p, b3p)

    # Weights/biases: constant index_map -> DMA'd once, VMEM-resident across grid.
    in_specs = [pl.BlockSpec((TB, Din), lambda i: (i, 0))] + [
        pl.BlockSpec(a.shape, lambda i: (0, 0)) for a in operands[1:]
    ]

    out = pl.pallas_call(
        functools.partial(_classifier_kernel,
                          negative_slope=negative_slope, eps=eps),
        out_shape=jax.ShapeDtypeStruct((Bp, Cp), jnp.float32),
        grid_spec=pltpu.PrefetchScalarGridSpec(
            num_scalar_prefetch=0,
            grid=(Bp // TB,),
            in_specs=in_specs,
            out_specs=pl.BlockSpec((TB, Cp), lambda i: (i, 0)),
        ),
        compiler_params=pltpu.CompilerParams(
            dimension_semantics=("parallel",)),   # batch tiles are independent
    )(*operands)

    return out[:B, :C]


def class_classifier_reference(x, params, *, negative_slope=0.2, eps=1e-5):
    """Pure-JAX reference with identical math (eval-mode dropout = identity)."""
    hi = jax.lax.Precision.HIGHEST

    def l2n(v):
        return v / jnp.sqrt(jnp.sum(v * v, axis=1, keepdims=True))

    def ln(v, g, b):
        mu = jnp.mean(v, axis=1, keepdims=True)
        var = jnp.mean((v - mu) ** 2, axis=1, keepdims=True)
        return (v - mu) / jnp.sqrt(var + eps) * g + b

    def act(v):
        if negative_slope == 0.0:
            return jnp.maximum(v, 0.0)
        return jnp.where(v >= 0.0, v, negative_slope * v)

    h = jnp.dot(l2n(x), params["w1"], precision=hi) + params["b1"]
    h = act(ln(h, params["g1"], params["beta1"]))
    h = jnp.dot(l2n(h), params["w2"], precision=hi) + params["b2"]
    h = act(ln(h, params["g2"], params["beta2"]))
    return jnp.dot(h, params["w3"], precision=hi) + params["b3"]


if __name__ == "__main__":
    key = jax.random.PRNGKey(0)
    # Small shapes: batch=2, input_dim=32, num_class=10; hidden 512/256 per the module.
    # args.model == 'dgcnn'  ->  LeakyReLU(0.2), bias=True.
    B, input_dim, num_class = 2, 32, 10
    ks = jax.random.split(key, 11)
    s = 0.05
    params = {
        "w1":    s * jax.random.normal(ks[0], (input_dim, 512), jnp.float32),
        "b1":    s * jax.random.normal(ks[1], (512,), jnp.float32),
        "g1":    1.0 + 0.1 * jax.random.normal(ks[2], (512,), jnp.float32),
        "beta1": 0.1 * jax.random.normal(ks[3], (512,), jnp.float32),
        "w2":    s * jax.random.normal(ks[4], (512, 256), jnp.float32),
        "b2":    s * jax.random.normal(ks[5], (256,), jnp.float32),
        "g2":    1.0 + 0.1 * jax.random.normal(ks[6], (256,), jnp.float32),
        "beta2": 0.1 * jax.random.normal(ks[7], (256,), jnp.float32),
        "w3":    s * jax.random.normal(ks[8], (256, num_class), jnp.float32),
        "b3":    s * jax.random.normal(ks[9], (num_class,), jnp.float32),
    }
    x = jax.random.normal(ks[10], (B, input_dim), dtype=jnp.float32)

    fwd = jax.jit(functools.partial(class_classifier_forward,
                                    negative_slope=0.2, eps=1e-5))
    logits = jax.block_until_ready(fwd(x, params))
    assert logits.shape == (B, num_class)

    ref = class_classifier_reference(x, params, negative_slope=0.2, eps=1e-5)
    # Tolerance covers f32-on-MXU multi-pass rounding vs. HIGHEST-precision reference.
    assert jnp.allclose(logits, ref, atol=1e-2, rtol=1e-2), "logits mismatch vs reference"

    print("KERNEL_OK")
</pallas_src>

<mosaic_0001>
module attributes {stable_mosaic.version = 11 : i64} {
  func.func @_classifier_kernel(%arg0: i32, %arg1: memref<8x32xf32, #tpu.memory_space<vmem>>, %arg2: memref<32x512xf32, #tpu.memory_space<vmem>>, %arg3: memref<1x512xf32, #tpu.memory_space<vmem>>, %arg4: memref<1x512xf32, #tpu.memory_space<vmem>>, %arg5: memref<1x512xf32, #tpu.memory_space<vmem>>, %arg6: memref<512x256xf32, #tpu.memory_space<vmem>>, %arg7: memref<1x256xf32, #tpu.memory_space<vmem>>, %arg8: memref<1x256xf32, #tpu.memory_space<vmem>>, %arg9: memref<1x256xf32, #tpu.memory_space<vmem>>, %arg10: memref<256x128xf32, #tpu.memory_space<vmem>>, %arg11: memref<1x128xf32, #tpu.memory_space<vmem>>, %arg12: memref<8x128xf32, #tpu.memory_space<vmem>>) attributes {dimension_semantics = [#tpu.dimension_semantics<parallel>], iteration_bounds = array<i64: 1>, scalar_prefetch = 0 : i64, scratch_operands = 0 : i64, tpu.core_type = #tpu.core_type<tc>, window_params = [{transform_indices = @transform_0, window_bounds = array<i64: 8, 32>}, {pipeline_mode = #tpu.pipeline_mode<synchronous>, transform_indices = @transform_1, window_bounds = array<i64: 32, 512>}, {pipeline_mode = #tpu.pipeline_mode<synchronous>, transform_indices = @transform_2, window_bounds = array<i64: 1, 512>}, {pipeline_mode = #tpu.pipeline_mode<synchronous>, transform_indices = @transform_3, window_bounds = array<i64: 1, 512>}, {pipeline_mode = #tpu.pipeline_mode<synchronous>, transform_indices = @transform_4, window_bounds = array<i64: 1, 512>}, {pipeline_mode = #tpu.pipeline_mode<synchronous>, transform_indices = @transform_5, window_bounds = array<i64: 512, 256>}, {pipeline_mode = #tpu.pipeline_mode<synchronous>, transform_indices = @transform_6, window_bounds = array<i64: 1, 256>}, {pipeline_mode = #tpu.pipeline_mode<synchronous>, transform_indices = @transform_7, window_bounds = array<i64: 1, 256>}, {pipeline_mode = #tpu.pipeline_mode<synchronous>, transform_indices = @transform_8, window_bounds = array<i64: 1, 256>}, {pipeline_mode = #tpu.pipeline_mode<synchronous>, transform_indices = @transform_9, window_bounds = array<i64: 256, 128>}, {pipeline_mode = #tpu.pipeline_mode<synchronous>, transform_indices = @transform_10, window_bounds = array<i64: 1, 128>}, {transform_indices = @transform_11, window_bounds = array<i64: 8, 128>}]} {
    %c0 = arith.constant 0 : index
    %c0_0 = arith.constant 0 : index
    %0 = vector.load %arg1[%c0, %c0_0] : memref<8x32xf32, #tpu.memory_space<vmem>>, vector<8x32xf32>
    %1 = arith.mulf %0, %0 : vector<8x32xf32>
    %cst = arith.constant dense<0.000000e+00> : vector<8xf32>
    %2 = vector.multi_reduction <add>, %1, %cst [1] : vector<8x32xf32> to vector<8xf32>
    %3 = vector.shape_cast %2 : vector<8xf32> to vector<8x1xf32>
    %4 = math.sqrt %3 : vector<8x1xf32>
    %5 = vector.broadcast %4 : vector<8x1xf32> to vector<8x32xf32>
    %6 = arith.divf %0, %5 : vector<8x32xf32>
    %c0_1 = arith.constant 0 : index
    %c0_2 = arith.constant 0 : index
    %7 = vector.load %arg2[%c0_1, %c0_2] : memref<32x512xf32, #tpu.memory_space<vmem>>, vector<32x512xf32>
    %cst_3 = arith.constant dense<0.000000e+00> : vector<8x512xf32>
    %8 = tpu.matmul %6, %7, %cst_3 {dimension_numbers = #tpu.dot_dimension_numbers<[1], [0], [0], [1], [0, 0, 1, 1], [], []>} : vector<8x32xf32>, vector<32x512xf32>, vector<8x512xf32> -> vector<8x512xf32>
    %c0_4 = arith.constant 0 : index
    %c0_5 = arith.constant 0 : index
    %9 = vector.load %arg3[%c0_4, %c0_5] : memref<1x512xf32, #tpu.memory_space<vmem>>, vector<1x512xf32>
    %10 = vector.broadcast %9 : vector<1x512xf32> to vector<8x512xf32>
    %11 = arith.addf %8, %10 : vector<8x512xf32>
    %c0_6 = arith.constant 0 : index
    %c0_7 = arith.constant 0 : index
    %12 = vector.load %arg4[%c0_6, %c0_7] : memref<1x512xf32, #tpu.memory_space<vmem>>, vector<1x512xf32>
    %c0_8 = arith.constant 0 : index
    %c0_9 = arith.constant 0 : index
    %13 = vector.load %arg5[%c0_8, %c0_9] : memref<1x512xf32, #tpu.memory_space<vmem>>, vector<1x512xf32>
    %cst_10 = arith.constant dense<0.000000e+00> : vector<8xf32>
    %14 = vector.multi_reduction <add>, %11, %cst_10 [1] : vector<8x512xf32> to vector<8xf32>
    %15 = vector.shape_cast %14 : vector<8xf32> to vector<8x1xf32>
    %cst_11 = arith.constant 5.120000e+02 : f32
    %16 = vector.broadcast %cst_11 : f32 to vector<8x1xf32>
    %17 = arith.divf %15, %16 : vector<8x1xf32>
    %18 = vector.broadcast %17 : vector<8x1xf32> to vector<8x512xf32>
    %19 = arith.subf %11, %18 : vector<8x512xf32>
    %20 = arith.mulf %19, %19 : vector<8x512xf32>
    %cst_12 = arith.constant dense<0.000000e+00> : vector<8xf32>
    %21 = vector.multi_reduction <add>, %20, %cst_12 [1] : vector<8x512xf32> to vector<8xf32>
    %22 = vector.shape_cast %21 : vector<8xf32> to vector<8x1xf32>
    %cst_13 = arith.constant 5.120000e+02 : f32
    %23 = vector.broadcast %cst_13 : f32 to vector<8x1xf32>
    %24 = arith.divf %22, %23 : vector<8x1xf32>
    %cst_14 = arith.constant 9.99999974E-6 : f32
    %25 = vector.broadcast %cst_14 : f32 to vector<8x1xf32>
    %26 = arith.addf %24, %25 : vector<8x1xf32>
    %27 = math.rsqrt %26 : vector<8x1xf32>
    %28 = vector.broadcast %27 : vector<8x1xf32> to vector<8x512xf32>
    %29 = arith.mulf %19, %28 : vector<8x512xf32>
    %30 = vector.broadcast %12 : vector<1x512xf32> to vector<8x512xf32>
    %31 = arith.mulf %29, %30 : vector<8x512xf32>
    %32 = vector.broadcast %13 : vector<1x512xf32> to vector<8x512xf32>
    %33 = arith.addf %31, %32 : vector<8x512xf32>
    %cst_15 = arith.constant 0.000000e+00 : f32
    %34 = vector.broadcast %cst_15 : f32 to vector<8x512xf32>
    %35 = arith.cmpf oge, %33, %34 : vector<8x512xf32>
    %cst_16 = arith.constant 2.000000e-01 : f32
    %36 = vector.broadcast %cst_16 : f32 to vector<8x512xf32>
    %37 = arith.mulf %36, %33 : vector<8x512xf32>
    %38 = arith.select %35, %33, %37 : vector<8x512xi1>, vector<8x512xf32>
    %39 = arith.mulf %38, %38 : vector<8x512xf32>
    %cst_17 = arith.constant dense<0.000000e+00> : vector<8xf32>
    %40 = vector.multi_reduction <add>, %39, %cst_17 [1] : vector<8x512xf32> to vector<8xf32>
    %41 = vector.shape_cast %40 : vector<8xf32> to vector<8x1xf32>
    %42 = math.sqrt %41 : vector<8x1xf32>
    %43 = vector.broadcast %42 : vector<8x1xf32> to vector<8x512xf32>
    %44 = arith.divf %38, %43 : vector<8x512xf32>
    %c0_18 = arith.constant 0 : index
    %c0_19 = arith.constant 0 : index
    %45 = vector.load %arg6[%c0_18, %c0_19] : memref<512x256xf32, #tpu.memory_space<vmem>>, vector<512x256xf32>
    %cst_20 = arith.constant dense<0.000000e+00> : vector<8x256xf32>
    %46 = tpu.matmul %44, %45, %cst_20 {dimension_numbers = #tpu.dot_dimension_numbers<[1], [0], [0], [1], [0, 0, 1, 1], [], []>} : vector<8x512xf32>, vector<512x256xf32>, vector<8x256xf32> -> vector<8x256xf32>
    %c0_21 = arith.constant 0 : index
    %c0_22 = arith.constant 0 : index
    %47 = vector.load %arg7[%c0_21, %c0_22] : memref<1x256xf32, #tpu.memory_space<vmem>>, vector<1x256xf32>
    %48 = vector.broadcast %47 : vector<1x256xf32> to vector<8x256xf32>
    %49 = arith.addf %46, %48 : vector<8x256xf32>
    %c0_23 = arith.constant 0 : index
    %c0_24 = arith.constant 0 : index
    %50 = vector.load %arg8[%c0_23, %c0_24] : memref<1x256xf32, #tpu.memory_space<vmem>>, vector<1x256xf32>
    %c0_25 = arith.constant 0 : index
    %c0_26 = arith.constant 0 : index
    %51 = vector.load %arg9[%c0_25, %c0_26] : memref<1x256xf32, #tpu.memory_space<vmem>>, vector<1x256xf32>
    %cst_27 = arith.constant dense<0.000000e+00> : vector<8xf32>
    %52 = vector.multi_reduction <add>, %49, %cst_27 [1] : vector<8x256xf32> to vector<8xf32>
    %53 = vector.shape_cast %52 : vector<8xf32> to vector<8x1xf32>
    %cst_28 = arith.constant 2.560000e+02 : f32
    %54 = vector.broadcast %cst_28 : f32 to vector<8x1xf32>
    %55 = arith.divf %53, %54 : vector<8x1xf32>
    %56 = vector.broadcast %55 : vector<8x1xf32> to vector<8x256xf32>
    %57 = arith.subf %49, %56 : vector<8x256xf32>
    %58 = arith.mulf %57, %57 : vector<8x256xf32>
    %cst_29 = arith.constant dense<0.000000e+00> : vector<8xf32>
    %59 = vector.multi_reduction <add>, %58, %cst_29 [1] : vector<8x256xf32> to vector<8xf32>
    %60 = vector.shape_cast %59 : vector<8xf32> to vector<8x1xf32>
    %cst_30 = arith.constant 2.560000e+02 : f32
    %61 = vector.broadcast %cst_30 : f32 to vector<8x1xf32>
    %62 = arith.divf %60, %61 : vector<8x1xf32>
    %cst_31 = arith.constant 9.99999974E-6 : f32
    %63 = vector.broadcast %cst_31 : f32 to vector<8x1xf32>
    %64 = arith.addf %62, %63 : vector<8x1xf32>
    %65 = math.rsqrt %64 : vector<8x1xf32>
    %66 = vector.broadcast %65 : vector<8x1xf32> to vector<8x256xf32>
    %67 = arith.mulf %57, %66 : vector<8x256xf32>
    %68 = vector.broadcast %50 : vector<1x256xf32> to vector<8x256xf32>
    %69 = arith.mulf %67, %68 : vector<8x256xf32>
    %70 = vector.broadcast %51 : vector<1x256xf32> to vector<8x256xf32>
    %71 = arith.addf %69, %70 : vector<8x256xf32>
    %cst_32 = arith.constant 0.000000e+00 : f32
    %72 = vector.broadcast %cst_32 : f32 to vector<8x256xf32>
    %73 = arith.cmpf oge, %71, %72 : vector<8x256xf32>
    %cst_33 = arith.constant 2.000000e-01 : f32
    %74 = vector.broadcast %cst_33 : f32 to vector<8x256xf32>
    %75 = arith.mulf %74, %71 : vector<8x256xf32>
    %76 = arith.select %73, %71, %75 : vector<8x256xi1>, vector<8x256xf32>
    %c0_34 = arith.constant 0 : index
    %c0_35 = arith.constant 0 : index
    %77 = vector.load %arg10[%c0_34, %c0_35] : memref<256x128xf32, #tpu.memory_space<vmem>>, vector<256x128xf32>
    %cst_36 = arith.constant dense<0.000000e+00> : vector<8x128xf32>
    %78 = tpu.matmul %76, %77, %cst_36 {dimension_numbers = #tpu.dot_dimension_numbers<[1], [0], [0], [1], [0, 0, 1, 1], [], []>} : vector<8x256xf32>, vector<256x128xf32>, vector<8x128xf32> -> vector<8x128xf32>
    %c0_37 = arith.constant 0 : index
    %c0_38 = arith.constant 0 : index
    %79 = vector.load %arg11[%c0_37, %c0_38] : memref<1x128xf32, #tpu.memory_space<vmem>>, vector<1x128xf32>
    %80 = vector.broadcast %79 : vector<1x128xf32> to vector<8x128xf32>
    %81 = arith.addf %78, %80 : vector<8x128xf32>
    %c0_39 = arith.constant 0 : index
    %c0_40 = arith.constant 0 : index
    %82 = vector.load %arg12[%c0_39, %c0_40] : memref<8x128xf32, #tpu.memory_space<vmem>>, vector<8x128xf32>
    tpu.vector_store %arg12[%c0_39, %c0_40], %81 {strides = array<i32>} : memref<8x128xf32, #tpu.memory_space<vmem>>, vector<8x128xf32>,
    return
  }
  func.func @transform_0(%arg0: i32) -> (i32, i32) {
    %c0_i32 = arith.constant 0 : i32
    %c0_i32_0 = arith.constant 0 : i32
    return %arg0, %c0_i32 : i32, i32
  }
  func.func @transform_1(%arg0: i32) -> (i32, i32) {
    %c0_i32 = arith.constant 0 : i32
    %c0_i32_0 = arith.constant 0 : i32
    %c0_i32_1 = arith.constant 0 : i32
    return %c0_i32, %c0_i32_0 : i32, i32
  }
  func.func @transform_2(%arg0: i32) -> (i32, i32) {
    %c0_i32 = arith.constant 0 : i32
    %c0_i32_0 = arith.constant 0 : i32
    %c0_i32_1 = arith.constant 0 : i32
    return %c0_i32, %c0_i32_0 : i32, i32
  }
  func.func @transform_3(%arg0: i32) -> (i32, i32) {
    %c0_i32 = arith.constant 0 : i32
    %c0_i32_0 = arith.constant 0 : i32
    %c0_i32_1 = arith.constant 0 : i32
    return %c0_i32, %c0_i32_0 : i32, i32
  }
  func.func @transform_4(%arg0: i32) -> (i32, i32) {
    %c0_i32 = arith.constant 0 : i32
    %c0_i32_0 = arith.constant 0 : i32
    %c0_i32_1 = arith.constant 0 : i32
    return %c0_i32, %c0_i32_0 : i32, i32
  }
  func.func @transform_5(%arg0: i32) -> (i32, i32) {
    %c0_i32 = arith.constant 0 : i32
    %c0_i32_0 = arith.constant 0 : i32
    %c0_i32_1 = arith.constant 0 : i32
    return %c0_i32, %c0_i32_0 : i32, i32
  }
  func.func @transform_6(%arg0: i32) -> (i32, i32) {
    %c0_i32 = arith.constant 0 : i32
    %c0_i32_0 = arith.constant 0 : i32
    %c0_i32_1 = arith.constant 0 : i32
    return %c0_i32, %c0_i32_0 : i32, i32
  }
  func.func @transform_7(%arg0: i32) -> (i32, i32) {
    %c0_i32 = arith.constant 0 : i32
    %c0_i32_0 = arith.constant 0 : i32
    %c0_i32_1 = arith.constant 0 : i32
    return %c0_i32, %c0_i32_0 : i32, i32
  }
  func.func @transform_8(%arg0: i32) -> (i32, i32) {
    %c0_i32 = arith.constant 0 : i32
    %c0_i32_0 = arith.constant 0 : i32
    %c0_i32_1 = arith.constant 0 : i32
    return %c0_i32, %c0_i32_0 : i32, i32
  }
  func.func @transform_9(%arg0: i32) -> (i32, i32) {
    %c0_i32 = arith.constant 0 : i32
    %c0_i32_0 = arith.constant 0 : i32
    %c0_i32_1 = arith.constant 0 : i32
    return %c0_i32, %c0_i32_0 : i32, i32
  }
  func.func @transform_10(%arg0: i32) -> (i32, i32) {
    %c0_i32 = arith.constant 0 : i32
    %c0_i32_0 = arith.constant 0 : i32
    %c0_i32_1 = arith.constant 0 : i32
    return %c0_i32, %c0_i32_0 : i32, i32
  }
  func.func @transform_11(%arg0: i32) -> (i32, i32) {
    %c0_i32 = arith.constant 0 : i32
    %c0_i32_0 = arith.constant 0 : i32
    return %arg0, %c0_i32 : i32, i32
  }
}

</mosaic_0001>

<bundles_post_ra>
// kernel: class_classifier_forward.1
= control target key start
LH: loop header
LB: loop body
LE: loop exit
PB: predicated region body
PF: predicated region fallthrough
CT: control target
= control target key end

     0   :  { %vm40_vm0 = vcmask 261120   ;;  %v753_v57 = vmov 512.0   ;;  %s1457_s0 = inlined_call_operand.vmem [shape: f32[8,32], index: 0, kind: input, shape index: {}]   ;;  %s1458_s1 = inlined_call_operand.vmem [shape: f32[32,512], index: 1, kind: input, shape index: {}]   ;;  %s1459_s2 = inlined_call_operand.vmem [shape: f32[1,512], index: 2, kind: input, shape index: {}]   ;;  %s1460_s5 = inlined_call_operand.vmem [shape: f32[512,256], index: 5, kind: input, shape index: {}]   ;;  %s1461_s3 = inlined_call_operand.vmem [shape: f32[1,512], index: 3, kind: input, shape index: {}]   ;;  %s1462_s4 = inlined_call_operand.vmem [shape: f32[1,512], index: 4, kind: input, shape index: {}]   ;;  %s1463_s6 = inlined_call_operand.vmem [shape: f32[1,256], index: 6, kind: input, shape index: {}]   ;;  %s1464_s10 = inlined_call_operand.vmem [shape: f32[1,128], index: 10, kind: input, shape index: {}]   ;;  %s1465_s9 = inlined_call_operand.vmem [shape: f32[256,128], index: 9, kind: input, shape index: {}]   ;;  %s1466_s7 = inlined_call_operand.vmem [shape: f32[1,256], index: 7, kind: input, shape index: {}]   ;;  %s1467_s8 = inlined_call_operand.vmem [shape: f32[1,256], index: 8, kind: input, shape index: {}]   ;;  %s1468_s11 = inlined_call_operand.vmem [shape: f32[8,128], index: 11, kind: output, shape index: {}]  }
   0x1   :  { %v818_v0 = vld [vmem:[%s1457_s0] sm:$0xff]  ;;  %v84_v4 = vld [vmem:[%s1458_s1 + $0x68] sm:$0xff]  ;;  %v85_v14 = vld [vmem:[%s1458_s1 + $0x70] sm:$0xff] }
   0x2   :  { %v39_v1 = vmul.f32 %v818_v0, %v818_v0  ;;  %v83_v3 = vld [vmem:[%s1458_s1 + $0x60] sm:$0xff]  ;;  %132 = vmatpush.msra.mxu3 %v84_v4  ;;  %v80_v6 = vld [vmem:[%s1458_s1 + $0x48] sm:$0xff]  ;;  %v86_v15 = vld [vmem:[%s1458_s1 + $0x78] sm:$0xff] }
   0x3   :  { %v79_v5 = vld [vmem:[%s1458_s1 + $0x40] sm:$0xff]  ;;  %112 = vmatpush.msra.mxu2 %v83_v3  ;;  %v76_v8 = vld [vmem:[%s1458_s1 + $0x28] sm:$0xff]  ;;  %v81_v16 = vld [vmem:[%s1458_s1 + $0x50] sm:$0xff] }
   0x4   :  { %v41_v2 = vsel %vm40_vm0, %v39_v1, 0.0  ;;  %v75_v7 = vld [vmem:[%s1458_s1 + $0x20] sm:$0xff]  ;;  %133 = vmatpush.msra.mxu3 %v80_v6  ;;  %v72_v10 = vld [vmem:[%s1458_s1 + $0x8] sm:$0xff]  ;;  %v82_v18 = vld [vmem:[%s1458_s1 + $0x58] sm:$0xff] }
   0x5   :  { %42 = vadd.xlane.f32.xlu0 %v41_v2  ;;  %113 = vmatpush.msra.mxu2 %v79_v5  ;;  %v71_v9 = vld [vmem:[%s1458_s1] sm:$0xff]  ;;  %v77_v19 = vld [vmem:[%s1458_s1 + $0x30] sm:$0xff]  ;;  %v78_v20 = vld [vmem:[%s1458_s1 + $0x38] sm:$0xff] }
   0x6   :  { %134 = vmatpush.msra.mxu3 %v76_v8  ;;  %v73_v22 = vld [vmem:[%s1458_s1 + $0x10] sm:$0xff]  ;;  %v74_v23 = vld [vmem:[%s1458_s1 + $0x18] sm:$0xff]  ;;  %v87_v41 = vld [vmem:[%s1459_s2] sm:$0xf] }
   0x7   :  { %114 = vmatpush.msra.mxu2 %v75_v7  ;;  %v89_v44 = vperm.slane %v87_v41, 0  ;;  %v90_v45 = vperm.slane %v87_v41, 1  ;;  %v91_v48 = vperm.slane %v87_v41, 2  ;;  %v92_v49 = vperm.slane %v87_v41, 3  ;;  %v321_v41 = vld [vmem:[%s1460_s5 + $0xa0] sm:$0xff] }
   0x8   :  { %135 = vmatpush.msra.mxu3 %v72_v10 }
   0x9   :  { %115 = vmatpush.msra.mxu2 %v71_v9 }
   0xa   :  { %172 = vmatpush.msrb.mxu3 %v86_v15 }
   0xb   :  { %152 = vmatpush.msrb.mxu2 %v85_v14 }
   0xc   :  { %173 = vmatpush.msrb.mxu3 %v82_v18  ;;  %v395_v18 = vld [vmem:[%s1460_s5 + $0x2f0] sm:$0xff] }
   0xd   :  { %153 = vmatpush.msrb.mxu2 %v81_v16  ;;  %v331_v16 = vld [vmem:[%s1460_s5 + $0xf0] sm:$0xff] }
   0xe   :  { %174 = vmatpush.msrb.mxu3 %v78_v20  ;;  %435 = vmatpush.msra.mxu0 %v331_v16  ;;  %v329_v20 = vld [vmem:[%s1460_s5 + $0xe0] sm:$0xff] }
   0xf   :  { %154 = vmatpush.msrb.mxu2 %v77_v19  ;;  %v427_v19 = vld [vmem:[%s1460_s5 + $0x3f0] sm:$0xff] }
  0x10   :  { %175 = vmatpush.msrb.mxu3 %v74_v23  ;;  %v393_v23 = vld [vmem:[%s1460_s5 + $0x2e0] sm:$0xff]  ;;  %436 = vmatpush.msra.mxu0 %v329_v20 }
  0x11   :  { %155 = vmatpush.msrb.mxu2 %v73_v22 }
  0x78   :  { %v43_v11 = vpop.xlane.xlu0 %42 }
  0x79   :  { %737 = vrsqrt.f32 %v43_v11  ;;  %vm51_vm1 = vcmp.eq.f32.partialorder %v43_v11, inf  ;;  %v54_v27 = vand.u32 2147483648, %v43_v11  ;;  %vm53_vm2 = vcmp.eq.f32.partialorder %v43_v11, 0.0 }
  0x7f   :  { %v738_v12 = vpop.eup %737 }
  0x80   :  { %v45_v13 = vmul.f32 %v738_v12, %v43_v11 }
  0x82   :  { %v46_v17 = vmul.f32 %v738_v12, %v45_v13 }
  0x84   :  { %v47_v21 = vmul.f32 0.5, %v46_v17  ;;  %v363_v17 = vld [vmem:[%s1460_s5 + $0x1f0] sm:$0xff] }
  0x85   :  { %455 = vmatpush.msra.mxu1 %v363_v17 }
  0x86   :  { %v48_v24 = vsub.f32 1.5, %v47_v21  ;;  %v361_v21 = vld [vmem:[%s1460_s5 + $0x1e0] sm:$0xff] }
  0x87   :  { %456 = vmatpush.msra.mxu1 %v361_v21 }
  0x88   :  { %v49_v25 = vmul.f32 %v738_v12, %v48_v24  ;;  %v425_v24 = vld [vmem:[%s1460_s5 + $0x3e0] sm:$0xff] }
  0x8a   :  { %v50_v26 = vmul.f32 %v49_v25, %v43_v11  ;;  %v327_v25 = vld [vmem:[%s1460_s5 + $0xd0] sm:$0xff] }
  0x8b   :  { %437 = vmatpush.msra.mxu0 %v327_v25  ;;  %v349_v25 = vld [vmem:[%s1460_s5 + $0x180] sm:$0xff] }
  0x8c   :  { %v52_v28 = vsel %vm51_vm1, %v43_v11, %v50_v26 }
  0x8d   :  { %v55_v29 = vsel %vm53_vm2, %v54_v27, %v52_v28  ;;  %v359_v27 = vld [vmem:[%s1460_s5 + $0x1d0] sm:$0xff] }
  0x8e   :  { %739 = vrcp.f32 %v55_v29  ;;  %v67_v33 = vand.u32 2147483648, %v55_v29  ;;  %v65_v35 = vand.u32 2147483647, %v55_v29  ;;  %vm61_vm4 = vweird.f32 %v55_v29  ;;  %v391_v28 = vld [vmem:[%s1460_s5 + $0x2d0] sm:$0xff]  ;;  %457 = vmatpush.msra.mxu1 %v359_v27  ;;  %v413_v27 = vld [vmem:[%s1460_s5 + $0x380] sm:$0xff] }
  0x8f   :  { %741 = vrcp.f32 %v753_v57 }
  0x90   :  { %v68_v37 = vor.u32 1.1754944e-38, %v67_v33  ;;  %vm66_vm6 = vcmp.eq.f32.partialorder %v65_v35, 8.507059e+37  ;;  %v389_v33 = vld [vmem:[%s1460_s5 + $0x2c0] sm:$0xff]  ;;  %v323_v35 = vld [vmem:[%s1460_s5 + $0xb0] sm:$0xff] }
  0x94   :  { %v740_v30 = vpop.eup %739 }
  0x95   :  { %v57_v31 = vmul.f32 %v740_v30, %v55_v29  ;;  %vm62_vm3 = vweird.f32 %v740_v30  ;;  %v742_v58 = vpop.eup %741  ;;  %v423_v29 = vld [vmem:[%s1460_s5 + $0x3d0] sm:$0xff] }
  0x96   :  { %vm63_vm5 = vmor %vm61_vm4, %vm62_vm3  ;;  %v188_v59 = vmul.f32 512.0, %v742_v58  ;;  %vm192_vm7 = vweird.f32 %v742_v58 }
  0x97   :  { %v58_v32 = vsub.f32 1.0, %v57_v31  ;;  %v357_v31 = vld [vmem:[%s1460_s5 + $0x1c0] sm:$0xff] }
  0x98   :  { %v189_v60 = vsub.f32 1.0, %v188_v59  ;;  %458 = vmatpush.msra.mxu1 %v357_v31  ;;  %v411_v31 = vld [vmem:[%s1460_s5 + $0x370] sm:$0xff] }
  0x99   :  { %v59_v34 = vmul.f32 %v740_v30, %v58_v32 }
  0x9a   :  { %v190_v61 = vmul.f32 %v742_v58, %v189_v60 }
  0x9b   :  { %v60_v36 = vadd.f32 %v740_v30, %v59_v34  ;;  %v421_v34 = vld [vmem:[%s1460_s5 + $0x3c0] sm:$0xff] }
  0x9c   :  { %v191_v62 = vadd.f32 %v742_v58, %v190_v61 }
  0x9d   :  { %v64_v38 = vsel %vm63_vm5, %v740_v30, %v60_v36  ;;  %v325_v30 = vld [vmem:[%s1460_s5 + $0xc0] sm:$0xff]  ;;  %v355_v36 = vld [vmem:[%s1460_s5 + $0x1b0] sm:$0xff] }
  0x9e   :  { %v69_v39 = vsel %vm66_vm6, %v68_v37, %v64_v38  ;;  %v193_v63 = vsel %vm192_vm7, %v742_v58, %v191_v62  ;;  %438 = vmatpush.msra.mxu0 %v325_v30  ;;  %v387_v38 = vld [vmem:[%s1460_s5 + $0x2b0] sm:$0xff]  ;;  %459 = vmatpush.msra.mxu1 %v355_v36 }
  0x9f   :  { %v70_v40 = vmul.f32 %v69_v39, %v818_v0  ;;  %v419_v39 = vld [vmem:[%s1460_s5 + $0x3b0] sm:$0xff] }
  0xa0   :  { %439 = vmatpush.msra.mxu0 %v323_v35  ;;  %v379_v30 = vld [vmem:[%s1460_s5 + $0x270] sm:$0xff]  ;;  %v409_v35 = vld [vmem:[%s1460_s5 + $0x360] sm:$0xff] }
  0xa1   :  { %730 = vmatmul.msk.f32.vlgmr.msra.gmra.mxu2 %vm40_vm0, %v70_v40  ;;  %731 = vmatmul.msk.f32.vlgmr.msra.gmra.mxu3 %vm40_vm0, %v70_v40  ;;  %v311_v36 = vld [vmem:[%s1460_s5 + $0x50] sm:$0xff] }
  0xa2   :  { %475 = vmatpush.msra.mxu2 %v395_v18  ;;  %495 = vmatpush.msra.mxu3 %v427_v19 }
  0xa3   :  { %440 = vmatpush.msra.mxu0 %v321_v41  ;;  %v341_v41 = vld [vmem:[%s1460_s5 + $0x140] sm:$0xff] }
  0xa4   :  { %476 = vmatpush.msra.mxu2 %v393_v23  ;;  %496 = vmatpush.msra.mxu3 %v425_v24  ;;  %v317_v24 = vld [vmem:[%s1460_s5 + $0x80] sm:$0xff] }
  0xa6   :  { %477 = vmatpush.msra.mxu2 %v391_v28  ;;  %497 = vmatpush.msra.mxu3 %v423_v29  ;;  %v315_v28 = vld [vmem:[%s1460_s5 + $0x70] sm:$0xff] }
  0xa7   :  { %v347_v29 = vld [vmem:[%s1460_s5 + $0x170] sm:$0xff] }
  0xa8   :  { %478 = vmatpush.msra.mxu2 %v389_v33  ;;  %498 = vmatpush.msra.mxu3 %v421_v34  ;;  %v345_v33 = vld [vmem:[%s1460_s5 + $0x160] sm:$0xff] }
  0xa9   :  { %732 = vmatmul.msk.f32.vlgmr.msrb.gmra.mxu2 %vm40_vm0, %v70_v40  ;;  %733 = vmatmul.msk.f32.vlgmr.msrb.gmra.mxu3 %vm40_vm0, %v70_v40  ;;  %v180_v40 = vld [vmem:[%s1461_s3] sm:$0xf] }
  0xaa   :  { %479 = vmatpush.msra.mxu2 %v387_v38  ;;  %499 = vmatpush.msra.mxu3 %v419_v39  ;;  %v377_v34 = vld [vmem:[%s1460_s5 + $0x260] sm:$0xff]  ;;  %v375_v38 = vld [vmem:[%s1460_s5 + $0x250] sm:$0xff] }
  0xab   :  { %v407_v39 = vld [vmem:[%s1460_s5 + $0x350] sm:$0xff] }
 0x124   :  { %v117_v42 = vpop.f32.mrf.mxu2  ;;  %v137_v43 = vpop.f32.mrf.mxu3 }
 0x125   :  { %v118_v46 = vadd.f32 %v117_v42, %v89_v44  ;;  %v138_v47 = vadd.f32 %v137_v43, %v90_v45  ;;  %v353_v42 = vld [vmem:[%s1460_s5 + $0x1a0] sm:$0xff] }
 0x126   :  { %v181_v44 = vld [vmem:[%s1462_s4] sm:$0xf]  ;;  %460 = vmatpush.msra.mxu1 %v353_v42 }
 0x127   :  { %v182_v52 = vadd.f32 %v138_v47, %v118_v46  ;;  %v385_v45 = vld [vmem:[%s1460_s5 + $0x2a0] sm:$0xff]  ;;  %v239_v58 = vperm.slane %v181_v44, 1  ;;  %v240_v59 = vperm.slane %v181_v44, 2  ;;  %v241_v60 = vperm.slane %v181_v44, 3 }
 0x128   :  { %480 = vmatpush.msra.mxu2 %v385_v45  ;;  %v373_v42 = vld [vmem:[%s1460_s5 + $0x240] sm:$0xff]  ;;  %v339_v45 = vld [vmem:[%s1460_s5 + $0x130] sm:$0xff] }
 0x12c   :  { %v157_v50 = vpop.f32.mrf.mxu2  ;;  %v177_v51 = vpop.f32.mrf.mxu3 }
 0x12d   :  { %v158_v53 = vadd.f32 %v157_v50, %v91_v48  ;;  %v178_v55 = vadd.f32 %v177_v51, %v92_v49  ;;  %v351_v48 = vld [vmem:[%s1460_s5 + $0x190] sm:$0xff]  ;;  %v225_v49 = vperm.slane %v180_v40, 0 }
 0x12e   :  { %v383_v51 = vld [vmem:[%s1460_s5 + $0x290] sm:$0xff]  ;;  %461 = vmatpush.msra.mxu1 %v351_v48  ;;  %v305_v48 = vld [vmem:[%s1460_s5 + $0x20] sm:$0xff] }
 0x12f   :  { %v183_v54 = vadd.f32 %v182_v52, %v158_v53  ;;  %v226_v52 = vperm.slane %v180_v40, 1  ;;  %481 = vmatpush.msra.mxu2 %v383_v51  ;;  %v401_v51 = vld [vmem:[%s1460_s5 + $0x320] sm:$0xff] }
 0x130   :  { %462 = vmatpush.msra.mxu1 %v349_v25  ;;  %v352_v25 = vld [vmem:[%s1460_s5 + $0x198] sm:$0xff] }
 0x131   :  { %v184_v56 = vadd.f32 %v183_v54, %v178_v55  ;;  %v228_v54 = vperm.slane %v180_v40, 3 }
 0x132   :  { %463 = vmatpush.msra.mxu1 %v347_v29  ;;  %v350_v29 = vld [vmem:[%s1460_s5 + $0x188] sm:$0xff] }
 0x133   :  { %185 = vadd.xlane.f32.xlu0 %v184_v56  ;;  %v415_v56 = vld [vmem:[%s1460_s5 + $0x390] sm:$0xff] }
 0x134   :  { %464 = vmatpush.msra.mxu1 %v345_v33  ;;  %v316_v33 = vld [vmem:[%s1460_s5 + $0x78] sm:$0xff] }
 0x1a6   :  { %v186_v0 = vpop.xlane.xlu0 %185 }
 0x1a7   :  { %v194_v1 = vmul.f32 %v193_v63, %v186_v0 }
 0x1a9   :  { %v879_v2 = vsub.f32 %v118_v46, %v194_v1  ;;  %v881_v3 = vsub.f32 %v138_v47, %v194_v1  ;;  %v883_v4 = vsub.f32 %v158_v53, %v194_v1  ;;  %v885_v5 = vsub.f32 %v178_v55, %v194_v1  ;;  %v417_v46 = vld [vmem:[%s1460_s5 + $0x3a0] sm:$0xff]  ;;  %v319_v47 = vld [vmem:[%s1460_s5 + $0x90] sm:$0xff] }
 0x1aa   :  { %v227_v53 = vperm.slane %v180_v40, 2  ;;  %v238_v55 = vperm.slane %v181_v44, 0  ;;  %500 = vmatpush.msra.mxu3 %v417_v46  ;;  %441 = vmatpush.msra.mxu0 %v319_v47  ;;  %v309_v40 = vld [vmem:[%s1460_s5 + $0x40] sm:$0xff]  ;;  %v307_v44 = vld [vmem:[%s1460_s5 + $0x30] sm:$0xff] }
 0x1ab   :  { %v199_v6 = vmul.f32 %v879_v2, %v879_v2  ;;  %v200_v7 = vmul.f32 %v881_v3, %v881_v3  ;;  %v201_v8 = vmul.f32 %v883_v4, %v883_v4  ;;  %v202_v10 = vmul.f32 %v885_v5, %v885_v5  ;;  %v371_v46 = vld [vmem:[%s1460_s5 + $0x230] sm:$0xff] }
 0x1ac   :  { %501 = vmatpush.msra.mxu3 %v415_v56  ;;  %442 = vmatpush.msra.mxu0 %v317_v24  ;;  %v403_v47 = vld [vmem:[%s1460_s5 + $0x330] sm:$0xff]  ;;  %v301_v56 = vld [vmem:[%s1460_s5] sm:$0xff]  ;;  %v320_v24 = vld [vmem:[%s1460_s5 + $0x98] sm:$0xff] }
 0x1ad   :  { %v203_v9 = vadd.f32 %v200_v7, %v199_v6 }
 0x1ae   :  { %502 = vmatpush.msra.mxu3 %v413_v27  ;;  %443 = vmatpush.msra.mxu0 %v315_v28  ;;  %v416_v27 = vld [vmem:[%s1460_s5 + $0x398] sm:$0xff]  ;;  %v318_v28 = vld [vmem:[%s1460_s5 + $0x88] sm:$0xff] }
 0x1af   :  { %v204_v11 = vadd.f32 %v203_v9, %v201_v8 }
 0x1b0   :  { %503 = vmatpush.msra.mxu3 %v411_v31  ;;  %v382_v31 = vld [vmem:[%s1460_s5 + $0x288] sm:$0xff] }
 0x1b1   :  { %v205_v12 = vadd.f32 %v204_v11, %v202_v10 }
 0x1b2   :  { %504 = vmatpush.msra.mxu3 %v409_v35  ;;  %v380_v35 = vld [vmem:[%s1460_s5 + $0x278] sm:$0xff] }
 0x1b3   :  { %206 = vadd.xlane.f32.xlu1 %v205_v12 }
 0x1b4   :  { %505 = vmatpush.msra.mxu3 %v407_v39  ;;  %v378_v39 = vld [vmem:[%s1460_s5 + $0x268] sm:$0xff] }
 0x226   :  { %v207_v13 = vpop.xlane.xlu1 %206 }
 0x227   :  { %v208_v14 = vmul.f32 %v207_v13, %v193_v63 }
 0x229   :  { %v895_v15 = vadd.f32 1e-05, %v208_v14 }
 0x22b   :  { %743 = vrsqrt.f32 %v895_v15  ;;  %vm216_vm9 = vweird.f32 %v895_v15 }
 0x231   :  { %v916_v22 = vpop.eup %743 }
 0x232   :  { %v211_v26 = vmul.f32 %v916_v22, %v895_v15  ;;  %vm217_vm8 = vweird.f32 %v916_v22 }
 0x233   :  { %vm218_vm10 = vmor %vm216_vm9, %vm217_vm8 }
 0x234   :  { %v212_v32 = vmul.f32 %v916_v22, %v211_v26  ;;  %v381_v26 = vld [vmem:[%s1460_s5 + $0x280] sm:$0xff] }
 0x235   :  { %482 = vmatpush.msra.mxu2 %v381_v26  ;;  %v384_v26 = vld [vmem:[%s1460_s5 + $0x298] sm:$0xff] }
 0x236   :  { %v213_v37 = vmul.f32 0.5, %v212_v32  ;;  %v313_v32 = vld [vmem:[%s1460_s5 + $0x60] sm:$0xff] }
 0x237   :  { %483 = vmatpush.msra.mxu2 %v379_v30  ;;  %444 = vmatpush.msra.mxu0 %v313_v32  ;;  %v414_v32 = vld [vmem:[%s1460_s5 + $0x388] sm:$0xff] }
 0x238   :  { %v214_v43 = vsub.f32 1.5, %v213_v37  ;;  %v343_v37 = vld [vmem:[%s1460_s5 + $0x150] sm:$0xff] }
 0x239   :  { %484 = vmatpush.msra.mxu2 %v377_v34  ;;  %445 = vmatpush.msra.mxu0 %v311_v36  ;;  %v348_v34 = vld [vmem:[%s1460_s5 + $0x178] sm:$0xff] }
 0x23a   :  { %v215_v50 = vmul.f32 %v916_v22, %v214_v43  ;;  %465 = vmatpush.msra.mxu1 %v343_v37  ;;  %v405_v43 = vld [vmem:[%s1460_s5 + $0x340] sm:$0xff]  ;;  %v412_v36 = vld [vmem:[%s1460_s5 + $0x378] sm:$0xff]  ;;  %v314_v37 = vld [vmem:[%s1460_s5 + $0x68] sm:$0xff] }
 0x23b   :  { %485 = vmatpush.msra.mxu2 %v375_v38  ;;  %446 = vmatpush.msra.mxu0 %v309_v40  ;;  %v346_v38 = vld [vmem:[%s1460_s5 + $0x168] sm:$0xff] }
 0x23c   :  { %v219_v57 = vsel %vm218_vm10, %v916_v22, %v215_v50  ;;  %466 = vmatpush.msra.mxu1 %v341_v41  ;;  %506 = vmatpush.msra.mxu3 %v405_v43  ;;  %v369_v50 = vld [vmem:[%s1460_s5 + $0x220] sm:$0xff]  ;;  %v410_v40 = vld [vmem:[%s1460_s5 + $0x368] sm:$0xff]  ;;  %v312_v41 = vld [vmem:[%s1460_s5 + $0x58] sm:$0xff] }
 0x23d   :  { %v220_v61 = vmul.f32 %v219_v57, %v879_v2  ;;  %v221_v62 = vmul.f32 %v219_v57, %v881_v3  ;;  %v222_v63 = vmul.f32 %v219_v57, %v883_v4  ;;  %v223_v0 = vmul.f32 %v219_v57, %v885_v5  ;;  %486 = vmatpush.msra.mxu2 %v373_v42  ;;  %v333_v57 = vld [vmem:[%s1460_s5 + $0x100] sm:$0xff]  ;;  %v344_v42 = vld [vmem:[%s1460_s5 + $0x158] sm:$0xff] }
 0x23e   :  { %447 = vmatpush.msra.mxu0 %v307_v44  ;;  %467 = vmatpush.msra.mxu1 %v339_v45  ;;  %v376_v43 = vld [vmem:[%s1460_s5 + $0x258] sm:$0xff] }
 0x23f   :  { %v233_v1 = vmul.f32 %v225_v49, %v220_v61  ;;  %v234_v6 = vmul.f32 %v226_v52, %v221_v62  ;;  %v235_v7 = vmul.f32 %v227_v53, %v222_v63  ;;  %v236_v8 = vmul.f32 %v228_v54, %v223_v0  ;;  %487 = vmatpush.msra.mxu2 %v371_v46  ;;  %v337_v49 = vld [vmem:[%s1460_s5 + $0x120] sm:$0xff]  ;;  %v303_v52 = vld [vmem:[%s1460_s5 + $0x10] sm:$0xff]  ;;  %v364_v61 = vld [vmem:[%s1460_s5 + $0x1f8] sm:$0xff] }
 0x240   :  { %507 = vmatpush.msra.mxu3 %v403_v47  ;;  %448 = vmatpush.msra.mxu0 %v305_v48  ;;  %v335_v53 = vld [vmem:[%s1460_s5 + $0x110] sm:$0xff]  ;;  %v396_v62 = vld [vmem:[%s1460_s5 + $0x2f8] sm:$0xff]  ;;  %v330_v0 = vld [vmem:[%s1460_s5 + $0xe8] sm:$0xff] }
 0x241   :  { %v246_v9 = vadd.f32 %v238_v55, %v233_v1  ;;  %v247_v10 = vadd.f32 %v239_v58, %v234_v6  ;;  %v248_v11 = vadd.f32 %v240_v59, %v235_v7  ;;  %v249_v12 = vadd.f32 %v241_v60, %v236_v8  ;;  %468 = vmatpush.msra.mxu1 %v337_v49  ;;  %v367_v54 = vld [vmem:[%s1460_s5 + $0x210] sm:$0xff]  ;;  %v365_v58 = vld [vmem:[%s1460_s5 + $0x200] sm:$0xff]  ;;  %v332_v60 = vld [vmem:[%s1460_s5 + $0xf8] sm:$0xff] }
 0x242   :  { %488 = vmatpush.msra.mxu2 %v369_v50  ;;  %508 = vmatpush.msra.mxu3 %v401_v51  ;;  %v399_v55 = vld [vmem:[%s1460_s5 + $0x310] sm:$0xff]  ;;  %v397_v59 = vld [vmem:[%s1460_s5 + $0x300] sm:$0xff]  ;;  %v428_v63 = vld [vmem:[%s1460_s5 + $0x3f8] sm:$0xff] }
 0x243   :  { %vm250_vm11 = vcmp.ge.f32.partialorder %v246_v9, 0.0  ;;  %vm251_vm12 = vcmp.ge.f32.partialorder %v247_v10, 0.0  ;;  %vm252_vm13 = vcmp.ge.f32.partialorder %v248_v11, 0.0  ;;  %v254_v2 = vmul.f32 0.2, %v246_v9  ;;  %449 = vmatpush.msra.mxu0 %v303_v52  ;;  %469 = vmatpush.msra.mxu1 %v335_v53  ;;  %v362_v1 = vld [vmem:[%s1460_s5 + $0x1e8] sm:$0xff] }
 0x244   :  { %v255_v13 = vmul.f32 0.2, %v247_v10  ;;  %v256_v3 = vmul.f32 0.2, %v248_v11  ;;  %vm253_vm14 = vcmp.ge.f32.partialorder %v249_v12, 0.0  ;;  %489 = vmatpush.msra.mxu2 %v367_v54  ;;  %509 = vmatpush.msra.mxu3 %v399_v55  ;;  %v394_v6 = vld [vmem:[%s1460_s5 + $0x2e8] sm:$0xff] }
 0x245   :  { %v257_v4 = vmul.f32 0.2, %v249_v12  ;;  %v1003_v14 = vsel %vm250_vm11, %v246_v9, %v254_v2  ;;  %450 = vmatpush.msra.mxu0 %v301_v56  ;;  %470 = vmatpush.msra.mxu1 %v333_v57  ;;  %v426_v7 = vld [vmem:[%s1460_s5 + $0x3e8] sm:$0xff]  ;;  %v328_v8 = vld [vmem:[%s1460_s5 + $0xd8] sm:$0xff] }
 0x246   :  { %v1005_v5 = vsel %vm251_vm12, %v247_v10, %v255_v13  ;;  %v1007_v15 = vsel %vm252_vm13, %v248_v11, %v256_v3  ;;  %v262_v16 = vmul.f32 %v1003_v14, %v1003_v14  ;;  %490 = vmatpush.msra.mxu2 %v365_v58  ;;  %510 = vmatpush.msra.mxu3 %v397_v59  ;;  %v360_v9 = vld [vmem:[%s1460_s5 + $0x1d8] sm:$0xff]  ;;  %v358_v2 = vld [vmem:[%s1460_s5 + $0x1c8] sm:$0xff] }
 0x247   :  { %v263_v17 = vmul.f32 %v1005_v5, %v1005_v5  ;;  %v1013_v18 = vsel %vm253_vm14, %v249_v12, %v257_v4  ;;  %v264_v19 = vmul.f32 %v1007_v15, %v1007_v15  ;;  %515 = vmatpush.msrb.mxu0 %v332_v60  ;;  %535 = vmatpush.msrb.mxu1 %v364_v61  ;;  %v392_v10 = vld [vmem:[%s1460_s5 + $0x2d8] sm:$0xff]  ;;  %v326_v12 = vld [vmem:[%s1460_s5 + $0xc8] sm:$0xff] }
 0x248   :  { %v265_v21 = vmul.f32 %v1013_v18, %v1013_v18  ;;  %555 = vmatpush.msrb.mxu2 %v396_v62  ;;  %575 = vmatpush.msrb.mxu3 %v428_v63  ;;  %v424_v11 = vld [vmem:[%s1460_s5 + $0x3d8] sm:$0xff]  ;;  %v390_v13 = vld [vmem:[%s1460_s5 + $0x2c8] sm:$0xff] }
 0x249   :  { %v266_v20 = vadd.f32 %v263_v17, %v262_v16  ;;  %516 = vmatpush.msrb.mxu0 %v330_v0  ;;  %536 = vmatpush.msrb.mxu1 %v362_v1  ;;  %v422_v3 = vld [vmem:[%s1460_s5 + $0x3c8] sm:$0xff]  ;;  %v324_v4 = vld [vmem:[%s1460_s5 + $0xb8] sm:$0xff] }
 0x24a   :  { %556 = vmatpush.msrb.mxu2 %v394_v6  ;;  %576 = vmatpush.msrb.mxu3 %v426_v7  ;;  %v356_v16 = vld [vmem:[%s1460_s5 + $0x1b8] sm:$0xff]  ;;  %v310_v46 = vld [vmem:[%s1460_s5 + $0x48] sm:$0xff] }
 0x24b   :  { %v267_v22 = vadd.f32 %v266_v20, %v264_v19  ;;  %517 = vmatpush.msrb.mxu0 %v328_v8  ;;  %537 = vmatpush.msrb.mxu1 %v360_v9  ;;  %v388_v17 = vld [vmem:[%s1460_s5 + $0x2b8] sm:$0xff]  ;;  %v322_v20 = vld [vmem:[%s1460_s5 + $0xa8] sm:$0xff] }
 0x24c   :  { %557 = vmatpush.msrb.mxu2 %v392_v10  ;;  %577 = vmatpush.msrb.mxu3 %v424_v11  ;;  %v420_v19 = vld [vmem:[%s1460_s5 + $0x3b8] sm:$0xff]  ;;  %v342_v47 = vld [vmem:[%s1460_s5 + $0x148] sm:$0xff] }
 0x24d   :  { %v268_v23 = vadd.f32 %v267_v22, %v265_v21  ;;  %518 = vmatpush.msrb.mxu0 %v326_v12  ;;  %538 = vmatpush.msrb.mxu1 %v358_v2  ;;  %v354_v21 = vld [vmem:[%s1460_s5 + $0x1a8] sm:$0xff]  ;;  %v408_v44 = vld [vmem:[%s1460_s5 + $0x358] sm:$0xff] }
 0x24e   :  { %558 = vmatpush.msrb.mxu2 %v390_v13  ;;  %578 = vmatpush.msrb.mxu3 %v422_v3  ;;  %v386_v22 = vld [vmem:[%s1460_s5 + $0x2a8] sm:$0xff]  ;;  %v308_v52 = vld [vmem:[%s1460_s5 + $0x38] sm:$0xff] }
 0x24f   :  { %269 = vadd.xlane.f32.xlu1 %v268_v23  ;;  %519 = vmatpush.msrb.mxu0 %v324_v4  ;;  %v418_v23 = vld [vmem:[%s1460_s5 + $0x3a8] sm:$0xff]  ;;  %v340_v53 = vld [vmem:[%s1460_s5 + $0x138] sm:$0xff] }
 0x250   :  { %539 = vmatpush.msrb.mxu1 %v356_v16  ;;  %559 = vmatpush.msrb.mxu2 %v388_v17  ;;  %v374_v49 = vld [vmem:[%s1460_s5 + $0x248] sm:$0xff]  ;;  %v372_v54 = vld [vmem:[%s1460_s5 + $0x238] sm:$0xff] }
 0x251   :  { %579 = vmatpush.msrb.mxu3 %v420_v19  ;;  %520 = vmatpush.msrb.mxu0 %v322_v20  ;;  %v406_v50 = vld [vmem:[%s1460_s5 + $0x348] sm:$0xff]  ;;  %v404_v55 = vld [vmem:[%s1460_s5 + $0x338] sm:$0xff] }
 0x252   :  { %540 = vmatpush.msrb.mxu1 %v354_v21  ;;  %560 = vmatpush.msrb.mxu2 %v386_v22  ;;  %v306_v56 = vld [vmem:[%s1460_s5 + $0x28] sm:$0xff]  ;;  %v304_v61 = vld [vmem:[%s1460_s5 + $0x18] sm:$0xff] }
 0x253   :  { %580 = vmatpush.msrb.mxu3 %v418_v23  ;;  %521 = vmatpush.msrb.mxu0 %v320_v24  ;;  %v338_v57 = vld [vmem:[%s1460_s5 + $0x128] sm:$0xff]  ;;  %v336_v62 = vld [vmem:[%s1460_s5 + $0x118] sm:$0xff] }
 0x254   :  { %541 = vmatpush.msrb.mxu1 %v352_v25  ;;  %561 = vmatpush.msrb.mxu2 %v384_v26  ;;  %v370_v59 = vld [vmem:[%s1460_s5 + $0x228] sm:$0xff]  ;;  %v368_v0 = vld [vmem:[%s1460_s5 + $0x218] sm:$0xff] }
 0x255   :  { %581 = vmatpush.msrb.mxu3 %v416_v27  ;;  %522 = vmatpush.msrb.mxu0 %v318_v28  ;;  %v402_v60 = vld [vmem:[%s1460_s5 + $0x328] sm:$0xff]  ;;  %v400_v1 = vld [vmem:[%s1460_s5 + $0x318] sm:$0xff] }
 0x256   :  { %542 = vmatpush.msrb.mxu1 %v350_v29  ;;  %562 = vmatpush.msrb.mxu2 %v382_v31  ;;  %v302_v6 = vld [vmem:[%s1460_s5 + $0x8] sm:$0xff] }
 0x257   :  { %582 = vmatpush.msrb.mxu3 %v414_v32  ;;  %523 = vmatpush.msrb.mxu0 %v316_v33  ;;  %v334_v7 = vld [vmem:[%s1460_s5 + $0x108] sm:$0xff] }
 0x258   :  { %543 = vmatpush.msrb.mxu1 %v348_v34  ;;  %563 = vmatpush.msrb.mxu2 %v380_v35  ;;  %v366_v9 = vld [vmem:[%s1460_s5 + $0x208] sm:$0xff] }
 0x259   :  { %583 = vmatpush.msrb.mxu3 %v412_v36  ;;  %524 = vmatpush.msrb.mxu0 %v314_v37  ;;  %v398_v10 = vld [vmem:[%s1460_s5 + $0x308] sm:$0xff] }
 0x25a   :  { %544 = vmatpush.msrb.mxu1 %v346_v38  ;;  %564 = vmatpush.msrb.mxu2 %v378_v39 }
 0x25b   :  { %584 = vmatpush.msrb.mxu3 %v410_v40  ;;  %525 = vmatpush.msrb.mxu0 %v312_v41 }
 0x25c   :  { %545 = vmatpush.msrb.mxu1 %v344_v42  ;;  %565 = vmatpush.msrb.mxu2 %v376_v43 }
 0x25d   :  { %585 = vmatpush.msrb.mxu3 %v408_v44  ;;  %526 = vmatpush.msrb.mxu0 %v310_v46 }
 0x25e   :  { %546 = vmatpush.msrb.mxu1 %v342_v47  ;;  %566 = vmatpush.msrb.mxu2 %v374_v49 }
 0x25f   :  { %586 = vmatpush.msrb.mxu3 %v406_v50  ;;  %527 = vmatpush.msrb.mxu0 %v308_v52 }
 0x260   :  { %547 = vmatpush.msrb.mxu1 %v340_v53  ;;  %567 = vmatpush.msrb.mxu2 %v372_v54 }
 0x261   :  { %587 = vmatpush.msrb.mxu3 %v404_v55  ;;  %528 = vmatpush.msrb.mxu0 %v306_v56 }
 0x262   :  { %548 = vmatpush.msrb.mxu1 %v338_v57  ;;  %568 = vmatpush.msrb.mxu2 %v370_v59  ;;  %v664_v59 = vld [vmem:[%s1465_s9 + $0x78] sm:$0xff] }
 0x263   :  { %588 = vmatpush.msrb.mxu3 %v402_v60  ;;  %529 = vmatpush.msrb.mxu0 %v304_v61  ;;  %v680_v60 = vld [vmem:[%s1465_s9 + $0xf8] sm:$0xff]  ;;  %v663_v61 = vld [vmem:[%s1465_s9 + $0x70] sm:$0xff] }
 0x264   :  { %549 = vmatpush.msrb.mxu1 %v336_v62  ;;  %569 = vmatpush.msrb.mxu2 %v368_v0  ;;  %v679_v62 = vld [vmem:[%s1465_s9 + $0xf0] sm:$0xff]  ;;  %v678_v0 = vld [vmem:[%s1465_s9 + $0xe8] sm:$0xff] }
 0x265   :  { %589 = vmatpush.msrb.mxu3 %v400_v1  ;;  %530 = vmatpush.msrb.mxu0 %v302_v6  ;;  %v661_v1 = vld [vmem:[%s1465_s9 + $0x60] sm:$0xff] }
 0x266   :  { %550 = vmatpush.msrb.mxu1 %v334_v7  ;;  %570 = vmatpush.msrb.mxu2 %v366_v9  ;;  %v677_v6 = vld [vmem:[%s1465_s9 + $0xe0] sm:$0xff]  ;;  %v660_v7 = vld [vmem:[%s1465_s9 + $0x58] sm:$0xff]  ;;  %v659_v9 = vld [vmem:[%s1465_s9 + $0x50] sm:$0xff] }
 0x267   :  { %590 = vmatpush.msrb.mxu3 %v398_v10  ;;  %v675_v10 = vld [vmem:[%s1465_s9 + $0xd0] sm:$0xff] }
 0x2c2   :  { %v1217_v30 = vpop.xlane.xlu1 %269 }
 0x2c3   :  { %745 = vrsqrt.f32 %v1217_v30  ;;  %vm278_vm15 = vcmp.eq.f32.partialorder %v1217_v30, inf  ;;  %v281_v12 = vand.u32 2147483648, %v1217_v30  ;;  %vm280_vm0 = vcmp.eq.f32.partialorder %v1217_v30, 0.0 }
 0x2c9   :  { %v746_v45 = vpop.eup %745 }
 0x2ca   :  { %v272_v48 = vmul.f32 %v746_v45, %v1217_v30 }
 0x2cc   :  { %v273_v51 = vmul.f32 %v746_v45, %v272_v48 }
 0x2ce   :  { %v274_v58 = vmul.f32 0.5, %v273_v51 }
 0x2d0   :  { %v275_v63 = vsub.f32 1.5, %v274_v58 }
 0x2d2   :  { %v276_v8 = vmul.f32 %v746_v45, %v275_v63  ;;  %v754_v45 = vmov 256.0   ;;  %v662_v63 = vld [vmem:[%s1465_s9 + $0x68] sm:$0xff] }
 0x2d4   :  { %v277_v11 = vmul.f32 %v276_v8, %v1217_v30  ;;  %v676_v8 = vld [vmem:[%s1465_s9 + $0xd8] sm:$0xff] }
 0x2d6   :  { %v279_v2 = vsel %vm278_vm15, %v1217_v30, %v277_v11  ;;  %v429_v30 = vld [vmem:[%s1463_s6] sm:$0x3]  ;;  %v658_v11 = vld [vmem:[%s1465_s9 + $0x48] sm:$0xff] }
 0x2d7   :  { %v282_v13 = vsel %vm280_vm0, %v281_v12, %v279_v2  ;;  %v431_v31 = vperm.slane %v429_v30, 0  ;;  %v674_v12 = vld [vmem:[%s1465_s9 + $0xc8] sm:$0xff]  ;;  %v657_v2 = vld [vmem:[%s1465_s9 + $0x40] sm:$0xff] }
 0x2d8   :  { %747 = vrcp.f32 %v282_v13  ;;  %v294_v17 = vand.u32 2147483648, %v282_v13  ;;  %v292_v20 = vand.u32 2147483647, %v282_v13  ;;  %vm288_vm2 = vweird.f32 %v282_v13 }
 0x2d9   :  { %749 = vrcp.f32 %v754_v45 }
 0x2da   :  { %v295_v22 = vor.u32 1.1754944e-38, %v294_v17  ;;  %vm293_vm4 = vcmp.eq.f32.partialorder %v292_v20, 8.507059e+37  ;;  %v671_v17 = vld [vmem:[%s1465_s9 + $0xb0] sm:$0xff]  ;;  %v670_v20 = vld [vmem:[%s1465_s9 + $0xa8] sm:$0xff] }
 0x2de   :  { %v748_v3 = vpop.eup %747 }
 0x2df   :  { %v284_v4 = vmul.f32 %v748_v3, %v282_v13  ;;  %vm289_vm1 = vweird.f32 %v748_v3  ;;  %v750_v46 = vpop.eup %749  ;;  %v673_v13 = vld [vmem:[%s1465_s9 + $0xc0] sm:$0xff] }
 0x2e0   :  { %vm290_vm3 = vmor %vm288_vm2, %vm289_vm1  ;;  %v601_v47 = vmul.f32 256.0, %v750_v46  ;;  %vm605_vm5 = vweird.f32 %v750_v46 }
 0x2e1   :  { %v285_v16 = vsub.f32 1.0, %v284_v4  ;;  %v672_v4 = vld [vmem:[%s1465_s9 + $0xb8] sm:$0xff] }
 0x2e2   :  { %v602_v48 = vsub.f32 1.0, %v601_v47 }
 0x2e3   :  { %v286_v19 = vmul.f32 %v748_v3, %v285_v16  ;;  %v655_v16 = vld [vmem:[%s1465_s9 + $0x30] sm:$0xff] }
 0x2e4   :  { %v603_v49 = vmul.f32 %v750_v46, %v602_v48 }
 0x2e5   :  { %v287_v21 = vadd.f32 %v748_v3, %v286_v19  ;;  %v654_v19 = vld [vmem:[%s1465_s9 + $0x28] sm:$0xff] }
 0x2e6   :  { %v604_v50 = vadd.f32 %v750_v46, %v603_v49 }
 0x2e7   :  { %v291_v23 = vsel %vm290_vm3, %v748_v3, %v287_v21  ;;  %v656_v3 = vld [vmem:[%s1465_s9 + $0x38] sm:$0xff]  ;;  %v653_v21 = vld [vmem:[%s1465_s9 + $0x20] sm:$0xff] }
 0x2e8   :  { %v296_v24 = vsel %vm293_vm4, %v295_v22, %v291_v23  ;;  %v1335_v51 = vsel %vm605_vm5, %v750_v46, %v604_v50  ;;  %v669_v22 = vld [vmem:[%s1465_s9 + $0xa0] sm:$0xff]  ;;  %v652_v23 = vld [vmem:[%s1465_s9 + $0x18] sm:$0xff] }
 0x2e9   :  { %v297_v25 = vmul.f32 %v296_v24, %v1003_v14  ;;  %v298_v26 = vmul.f32 %v296_v24, %v1005_v5  ;;  %v299_v27 = vmul.f32 %v296_v24, %v1007_v15  ;;  %v300_v28 = vmul.f32 %v296_v24, %v1013_v18  ;;  %v668_v24 = vld [vmem:[%s1465_s9 + $0x98] sm:$0xff] }
 0x2ea   :  { %v432_v5 = vperm.slane %v429_v30, 1  ;;  %v665_v30 = vld [vmem:[%s1465_s9 + $0x80] sm:$0xff] }
 0x2eb   :  { %451 = vmatmul.f32.vlgmr.msra.gmra.mxu0 %v297_v25  ;;  %471 = vmatmul.f32.vlgmr.msra.gmra.mxu1 %v298_v26 }
 0x2ec   :  { %491 = vmatmul.f32.vlgmr.msra.gmra.mxu2 %v299_v27  ;;  %511 = vmatmul.f32.vlgmr.msra.gmra.mxu3 %v300_v28 }
 0x2ed   :  { %685 = vmatpush.msra.mxu0 %v664_v59  ;;  %705 = vmatpush.msra.mxu1 %v680_v60 }
 0x2ef   :  { %686 = vmatpush.msra.mxu0 %v663_v61  ;;  %706 = vmatpush.msra.mxu1 %v679_v62 }
 0x2f1   :  { %687 = vmatpush.msra.mxu0 %v662_v63  ;;  %707 = vmatpush.msra.mxu1 %v678_v0 }
 0x2f3   :  { %531 = vmatmul.f32.vlgmr.msrb.gmra.mxu0 %v297_v25  ;;  %551 = vmatmul.f32.vlgmr.msrb.gmra.mxu1 %v298_v26  ;;  %v651_v25 = vld [vmem:[%s1465_s9 + $0x10] sm:$0xff] }
 0x2f4   :  { %571 = vmatmul.f32.vlgmr.msrb.gmra.mxu2 %v299_v27  ;;  %591 = vmatmul.f32.vlgmr.msrb.gmra.mxu3 %v300_v28  ;;  %v667_v26 = vld [vmem:[%s1465_s9 + $0x90] sm:$0xff]  ;;  %v650_v27 = vld [vmem:[%s1465_s9 + $0x8] sm:$0xff] }
 0x2f5   :  { %688 = vmatpush.msra.mxu0 %v661_v1  ;;  %708 = vmatpush.msra.mxu1 %v677_v6  ;;  %v666_v28 = vld [vmem:[%s1465_s9 + $0x88] sm:$0xff] }
 0x2f7   :  { %689 = vmatpush.msra.mxu0 %v660_v7  ;;  %709 = vmatpush.msra.mxu1 %v676_v8 }
 0x2f9   :  { %690 = vmatpush.msra.mxu0 %v659_v9  ;;  %710 = vmatpush.msra.mxu1 %v675_v10 }
 0x2fb   :  { %691 = vmatpush.msra.mxu0 %v658_v11  ;;  %711 = vmatpush.msra.mxu1 %v674_v12 }
 0x2fd   :  { %692 = vmatpush.msra.mxu0 %v657_v2  ;;  %712 = vmatpush.msra.mxu1 %v673_v13 }
 0x2ff   :  { %693 = vmatpush.msra.mxu0 %v656_v3  ;;  %713 = vmatpush.msra.mxu1 %v672_v4 }
 0x301   :  { %694 = vmatpush.msra.mxu0 %v655_v16  ;;  %714 = vmatpush.msra.mxu1 %v671_v17 }
 0x303   :  { %695 = vmatpush.msra.mxu0 %v654_v19  ;;  %715 = vmatpush.msra.mxu1 %v670_v20 }
 0x305   :  { %696 = vmatpush.msra.mxu0 %v653_v21  ;;  %716 = vmatpush.msra.mxu1 %v669_v22 }
 0x307   :  { %697 = vmatpush.msra.mxu0 %v652_v23  ;;  %717 = vmatpush.msra.mxu1 %v668_v24 }
 0x309   :  { %698 = vmatpush.msra.mxu0 %v651_v25  ;;  %718 = vmatpush.msra.mxu1 %v667_v26 }
 0x30b   :  { %699 = vmatpush.msra.mxu0 %v650_v27  ;;  %719 = vmatpush.msra.mxu1 %v666_v28 }
 0x30d   :  { %720 = vmatpush.msra.mxu1 %v665_v30 }
 0x368   :  { %v452_v29 = vpop.f32.mrf.mxu0  ;;  %v472_v14 = vpop.f32.mrf.mxu1 }
 0x369   :  { %v453_v33 = vadd.f32 %v452_v29, %v431_v31  ;;  %v649_v29 = vld [vmem:[%s1465_s9] sm:$0xff] }
 0x36a   :  { %700 = vmatpush.msra.mxu0 %v649_v29 }
 0x36b   :  { %v473_v35 = vadd.f32 %v472_v14, %v453_v33 }
 0x36f   :  { %v492_v32 = vpop.f32.mrf.mxu2  ;;  %v512_v15 = vpop.f32.mrf.mxu3 }
 0x370   :  { %v532_v18 = vpop.f32.mrf.mxu0  ;;  %v552_v36 = vpop.f32.mrf.mxu1  ;;  %v493_v37 = vadd.f32 %v492_v32, %v473_v35  ;;  %v595_v35 = vld [vmem:[%s1466_s7] sm:$0x3] }
 0x371   :  { %v533_v34 = vadd.f32 %v532_v18, %v432_v5 }
 0x372   :  { %v513_v42 = vadd.f32 %v512_v15, %v493_v37  ;;  %v596_v37 = vld [vmem:[%s1467_s8] sm:$0x3] }
 0x373   :  { %v553_v38 = vadd.f32 %v552_v36, %v533_v34 }
 0x377   :  { %v572_v39 = vpop.f32.mrf.mxu2  ;;  %v592_v41 = vpop.f32.mrf.mxu3 }
 0x378   :  { %v573_v40 = vadd.f32 %v572_v39, %v553_v38  ;;  %v630_v38 = vperm.slane %v595_v35, 0  ;;  %v631_v39 = vperm.slane %v595_v35, 1 }
 0x37a   :  { %v593_v43 = vadd.f32 %v592_v41, %v573_v40 }
 0x37c   :  { %v597_v44 = vadd.f32 %v593_v43, %v513_v42 }
 0x37e   :  { %598 = vadd.xlane.f32.xlu2 %v597_v44  ;;  %v638_v44 = vperm.slane %v596_v37, 1 }
 0x3f1   :  { %v599_v52 = vpop.xlane.xlu2 %598 }
 0x3f2   :  { %v607_v53 = vmul.f32 %v1335_v51, %v599_v52 }
 0x3f4   :  { %v1338_v54 = vsub.f32 %v513_v42, %v607_v53  ;;  %v1340_v55 = vsub.f32 %v593_v43, %v607_v53  ;;  %v637_v43 = vperm.slane %v596_v37, 0  ;;  %v736_v53 = vld [vmem:[%s1464_s10] ss:$0 sm:$0xff] }
 0x3f6   :  { %v610_v56 = vmul.f32 %v1338_v54, %v1338_v54  ;;  %v611_v57 = vmul.f32 %v1340_v55, %v1340_v55 }
 0x3f8   :  { %v612_v58 = vadd.f32 %v611_v57, %v610_v56 }
 0x3fa   :  { %613 = vadd.xlane.f32.xlu2 %v612_v58 }
 0x46d   :  { %v614_v14 = vpop.xlane.xlu2 %613 }
 0x46e   :  { %v615_v31 = vmul.f32 %v614_v14, %v1335_v51 }
 0x470   :  { %v616_v5 = vadd.f32 1e-05, %v615_v31 }
 0x472   :  { %751 = vrsqrt.f32 %v616_v5  ;;  %vm623_vm7 = vweird.f32 %v616_v5 }
 0x478   :  { %v752_v32 = vpop.eup %751 }
 0x479   :  { %v618_v15 = vmul.f32 %v752_v32, %v616_v5  ;;  %vm624_vm6 = vweird.f32 %v752_v32 }
 0x47a   :  { %vm625_vm8 = vmor %vm623_vm7, %vm624_vm6 }
 0x47b   :  { %v619_v33 = vmul.f32 %v752_v32, %v618_v15 }
 0x47d   :  { %v620_v18 = vmul.f32 0.5, %v619_v33 }
 0x47f   :  { %v621_v34 = vsub.f32 1.5, %v620_v18 }
 0x481   :  { %v622_v36 = vmul.f32 %v752_v32, %v621_v34 }
 0x483   :  { %v626_v40 = vsel %vm625_vm8, %v752_v32, %v622_v36 }
 0x484   :  { %v627_v41 = vmul.f32 %v626_v40, %v1338_v54  ;;  %v628_v42 = vmul.f32 %v626_v40, %v1340_v55 }
 0x486   :  { %v634_v45 = vmul.f32 %v630_v38, %v627_v41  ;;  %v635_v46 = vmul.f32 %v631_v39, %v628_v42 }
 0x488   :  { %v641_v47 = vadd.f32 %v637_v43, %v634_v45  ;;  %v642_v48 = vadd.f32 %v638_v44, %v635_v46 }
 0x48a   :  { %vm643_vm9 = vcmp.ge.f32.partialorder %v641_v47, 0.0  ;;  %v645_v49 = vmul.f32 0.2, %v641_v47  ;;  %vm644_vm10 = vcmp.ge.f32.partialorder %v642_v48, 0.0  ;;  %v646_v50 = vmul.f32 0.2, %v642_v48 }
 0x48c   :  { %v647_v51 = vsel %vm643_vm9, %v641_v47, %v645_v49  ;;  %v648_v52 = vsel %vm644_vm10, %v642_v48, %v646_v50 }
 0x48d   :  { %701 = vmatmul.f32.vlgmr.msra.gmra.mxu0 %v647_v51  ;;  %721 = vmatmul.f32.vlgmr.msra.gmra.mxu1 %v648_v52 }
 0x50a   :  { %v702_v54 = vpop.f32.mrf.mxu0  ;;  %v722_v56 = vpop.f32.mrf.mxu1 }
 0x50b   :  { %v703_v55 = vadd.f32 %v736_v53, %v702_v54 }
 0x50d   :  { %v723_v57 = vadd.f32 %v722_v56, %v703_v55 }
 0x50f   :  { %725 = vst [vmem:[%s1468_s11] sm:$0xff] %v723_v57 }

</bundles_post_ra>
